<compile_context>
chip_gen: v6e
topology: v6e:2x2x1
jax: 0.10.0
libtpu: 0.0.40
codegen_flags: <defaults>
</compile_context>

<pallas_src>
import numpy as np
import jax
import jax.numpy as jnp
from jax.experimental import pallas as pl
from jax.experimental.pallas import tpu as pltpu

# murmur3 fmix32 constants as numpy scalars -> jaxpr literals (never captured consts).
_FMIX_C1 = np.uint32(0x85EBCA6B)
_FMIX_C2 = np.uint32(0xC2B2AE35)
_GOLD_I32 = np.int32(-1640531527)        # 0x9E3779B9 as signed int32


def _make_mapped_dropout_kernel(rows_blk: int, lane: int):
    blk_elems = rows_blk * lane          # Python int, fits int32 for <=8 MiB blocks

    def kernel(seed_ref, thresh_ref, invr_ref, x_ref, o_ref):
        # Per-row sidebands (1/lane the volume of the activations).
        t = thresh_ref[...]              # (rows_blk, 1) uint32: keep iff hash < t
        inv_rate = invr_ref[...]         # (rows_blk, 1) f32: 1/keep_rate (0 if rate == 0)

        # Counter-based PRNG: murmur3 finalizer of (seed, global flat element index).
        # All scalar terms folded into one base offset (one vector add total).
        base = pl.program_id(0) * blk_elems + seed_ref[0] * _GOLD_I32
        i = jax.lax.broadcasted_iota(jnp.int32, (rows_blk, lane), 0)
        j = jax.lax.broadcasted_iota(jnp.int32, (rows_blk, lane), 1)
        h = (i * lane + (j + base)).astype(jnp.uint32)
        h = h ^ (h >> 16)
        h = h * _FMIX_C1
        h = h ^ (h >> 13)
        h = h * _FMIX_C2
        h = h ^ (h >> 16)                # well-mixed 32 random bits

        keep = h < t                     # raw 32-bit compare: Bernoulli(keep_rate[row])

        # TODO(synk): for bf16/int8 inputs, hash once per 32 bits of data and slice
        # into 2/4 sub-threshold compares to halve/quarter the hash work per element.
        x = x_ref[...]                   # native dtype, no f32 upcast
        scaled = x * inv_rate.astype(x.dtype)
        o_ref[...] = jnp.where(keep, scaled, 0).astype(o_ref.dtype)

    return kernel


def _choose_layout(batch, flat, itemsize, target_block_bytes):
    """Pick (lane, rows_per_sample, rows_blk, padded_flat).

    Guarantees: lane % 128 == 0 (or lane-padding requested via padded_flat),
    rows_blk divides batch * padded_flat // lane, rows_blk % 8 == 0 or equals
    the full row count.  No row padding ever needed.
    """
    if flat % 128 == 0:
        lane = None
        # Widest lane that keeps the total row count a multiple of 8 (fills sublanes).
        for cand in (2048, 1024, 512, 256, 128):
            if flat % cand == 0 and (batch * (flat // cand)) % 8 == 0:
                lane = cand
                break
        if lane is None:
            for cand in (2048, 1024, 512, 256, 128):
                if flat % cand == 0:
                    lane = cand
                    break
        padded_flat = flat
    else:
        # Lane-pad the feature dim to the next multiple of 128 (host pad + slice,
        # only on this path) so every block stays (8,128)-aligned and stores unmasked.
        lane = 128
        padded_flat = -(-flat // 128) * 128

    rows_per_sample = padded_flat // lane
    total_rows = batch * rows_per_sample

    max_rows = max(8, (target_block_bytes // (lane * itemsize)) // 8 * 8)

    if total_rows % 8 != 0:
        # TODO(synk): a huge total_rows not divisible by 8 forces a single full-dim block.
        return lane, rows_per_sample, total_rows, padded_flat

    limit = min(max_rows, total_rows)
    divs = [d for d in range(8, limit + 1, 8) if total_rows % d == 0]
    if not divs:
        return lane, rows_per_sample, total_rows, padded_flat

    best = max(divs)
    # Prefer an even grid length (equal work for both v7x TensorCores) unless it
    # would shrink the block by more than 2x.
    even = [d for d in divs if (total_rows // d) % 2 == 0]
    if even and max(even) * 2 >= best:
        best = max(even)
    return lane, rows_per_sample, best, padded_flat


def mapped_dropout(x, y, keep_rates, seed, *, training=True,
                   target_block_bytes=4 * 1024 * 1024):
    """Pallas implementation of MappedDropout.forward.

    x          : [B, ...] activations (e.g. [B, C, H, W])
    y          : [B] int class labels
    keep_rates : [nClasses] keep probabilities (= 1 - drop_rates)
    seed       : int PRNG seed
    """
    if not training:
        return x

    xshape = x.shape
    batch = xshape[0]
    flat = 1
    for s in xshape[1:]:
        flat *= s

    itemsize = jnp.dtype(x.dtype).itemsize
    target_block_bytes = min(int(target_block_bytes), 8 * 1024 * 1024)
    lane, rows_per_sample, rows_blk, padded_flat = _choose_layout(
        batch, flat, itemsize, target_block_bytes)
    total_rows = batch * rows_per_sample

    # Host/XLA glue (all O(B) or O(R) sized -- no full-array copies on the common path).
    rates = jnp.clip(keep_rates[y].astype(jnp.float32), 0.0, 1.0)          # [B]
    t_f = rates * jnp.float32(4294967296.0)                                # rate * 2^32
    t_u32 = jnp.minimum(t_f, jnp.float32(4294967040.0)).astype(jnp.uint32)
    t_u32 = jnp.where(rates >= 1.0, jnp.uint32(0xFFFFFFFF), t_u32)         # rate=1 -> keep ~1
    inv = jnp.where(rates > 0.0, 1.0 / rates, 0.0).astype(jnp.float32)     # rate=0 -> zeros

    thresh_rows = jnp.repeat(t_u32, rows_per_sample)[:, None]              # [R, 1] uint32
    inv_rows = jnp.repeat(inv, rows_per_sample)[:, None]                   # [R, 1] f32

    x2 = x.reshape(batch, flat)
    if padded_flat != flat:
        # Only when flat % 128 != 0: lane-pad so blocks stay (8,128)-aligned.
        x2 = jnp.pad(x2, ((0, 0), (0, padded_flat - flat)))
    x2 = x2.reshape(total_rows, lane)

    seed_arr = jnp.asarray(seed, dtype=jnp.int32).reshape(1)

    grid = (total_rows // rows_blk,)
    kernel = _make_mapped_dropout_kernel(rows_blk, lane)

    # VMEM accounting: 2 in + 2 out activation buffers + 2x2 lane-padded sidebands.
    block_bytes = rows_blk * lane * itemsize
    side_bytes = rows_blk * 128 * 4
    vmem_need = 4 * block_bytes + 4 * side_bytes + (1 << 20)
    vmem_limit = int(min(max(vmem_need, 32 << 20), 56 << 20))

    elems = total_rows * lane
    cost = pl.CostEstimate(flops=16 * elems, transcendentals=0,
                           bytes_accessed=2 * elems * itemsize)

    # TODO(synk): optionally alias x2 to the output (input_output_aliases) when the
    # caller donates x; skipped here to keep the wrapper side-effect free.
    out = pl.pallas_call(
        kernel,
        out_shape=jax.ShapeDtypeStruct((total_rows, lane), x.dtype),
        grid_spec=pltpu.PrefetchScalarGridSpec(
            num_scalar_prefetch=1,                                   # seed -> SMEM
            grid=grid,
            in_specs=[
                pl.BlockSpec((rows_blk, 1), lambda i, *_: (i, 0)),   # keep thresholds
                pl.BlockSpec((rows_blk, 1), lambda i, *_: (i, 0)),   # 1/keep_rate
                pl.BlockSpec((rows_blk, lane), lambda i, *_: (i, 0)),
            ],
            out_specs=pl.BlockSpec((rows_blk, lane), lambda i, *_: (i, 0)),
        ),
        compiler_params=pltpu.CompilerParams(
            dimension_semantics=("parallel",),   # stateless PRNG -> shard across TCs
            vmem_limit_bytes=vmem_limit,
        ),
        cost_estimate=cost,
    )(seed_arr, thresh_rows, inv_rows, x2)

    out = out.reshape(batch, padded_flat)
    if padded_flat != flat:
        out = out[:, :flat]
    return out.reshape(xshape)


if __name__ == "__main__":
    key = jax.random.PRNGKey(0)
    k_x, k_y = jax.random.split(key)

    B, C, H, W = 2, 4, 16, 16
    n_classes = 10

    # Deterministic parameter init (drop_rates per class -> keep_rates).
    drop_rates = jnp.linspace(0.1, 0.5, n_classes, dtype=jnp.float32)
    keep_rates = 1.0 - drop_rates

    x = jax.random.normal(k_x, (B, C, H, W), dtype=jnp.float32)
    y = jax.random.randint(k_y, (B,), 0, n_classes, dtype=jnp.int32)

    out = mapped_dropout(x, y, keep_rates, seed=1234, training=True)
    out = jax.block_until_ready(out)

    # Shape/dtype preserved.
    assert out.shape == x.shape and out.dtype == x.dtype

    # Kept elements equal x / keep_rate[y[b]]; dropped elements are exactly zero.
    rates_b = keep_rates[y].reshape(B, 1, 1, 1)
    kept = out != 0          # test artifact: misclassifies exact zeros in x (prob ~0 here)
    scaled = x / rates_b
    assert bool(jnp.all(jnp.where(kept, jnp.abs(out - scaled) < 1e-5, out == 0)))

    # Keep fraction per sample is statistically consistent with its keep rate.
    kept_frac = kept.reshape(B, -1).astype(jnp.float32).mean(axis=1)
    assert bool(jnp.all(jnp.abs(kept_frac - keep_rates[y]) < 0.12))

    # Eval mode is identity.
    out_eval = mapped_dropout(x, y, keep_rates, seed=1234, training=False)
    assert bool(jnp.all(out_eval == x))

    print("KERNEL_OK")
</pallas_src>

<mosaic_0001>
module attributes {stable_mosaic.version = 11 : i64} {
  func.func @kernel(%arg0: i32, %arg1: memref<1xi32, #tpu.memory_space<smem>>, %arg2: memref<8x1xi32, #tpu.memory_space<vmem>>, %arg3: memref<8x1xf32, #tpu.memory_space<vmem>>, %arg4: memref<8x256xf32, #tpu.memory_space<vmem>>, %arg5: memref<8x256xf32, #tpu.memory_space<vmem>>) attributes {dimension_semantics = [#tpu.dimension_semantics<parallel>], iteration_bounds = array<i64: 1>, scalar_prefetch = 1 : i64, scratch_operands = 0 : i64, tpu.core_type = #tpu.core_type<tc>, window_params = [{transform_indices = @transform_0, window_bounds = array<i64: 8, 1>}, {transform_indices = @transform_1, window_bounds = array<i64: 8, 1>}, {transform_indices = @transform_2, window_bounds = array<i64: 8, 256>}, {transform_indices = @transform_3, window_bounds = array<i64: 8, 256>}]} {
    %c0 = arith.constant 0 : index
    %c0_0 = arith.constant 0 : index
    %0 = vector.load %arg2[%c0, %c0_0] : memref<8x1xi32, #tpu.memory_space<vmem>>, vector<8x1xi32>
    %c0_1 = arith.constant 0 : index
    %c0_2 = arith.constant 0 : index
    %1 = vector.load %arg3[%c0_1, %c0_2] : memref<8x1xf32, #tpu.memory_space<vmem>>, vector<8x1xf32>
    %c2048_i32 = arith.constant 2048 : i32
    %2 = arith.muli %arg0, %c2048_i32 : i32
    %c0_3 = arith.constant 0 : index
    %3 = memref.load %arg1[%c0_3] : memref<1xi32, #tpu.memory_space<smem>>
    %c-1640531527_i32 = arith.constant -1640531527 : i32
    %4 = arith.muli %3, %c-1640531527_i32 : i32
    %5 = arith.addi %2, %4 : i32
    %6 = tpu.iota {dimensions = array<i32: 0>} : vector<8x256xi32>
    %7 = tpu.iota {dimensions = array<i32: 1>} : vector<8x256xi32>
    %c256_i32 = arith.constant 256 : i32
    %8 = vector.broadcast %c256_i32 : i32 to vector<8x256xi32>
    %9 = arith.muli %6, %8 : vector<8x256xi32>
    %10 = vector.broadcast %5 : i32 to vector<8x256xi32>
    %11 = arith.addi %7, %10 : vector<8x256xi32>
    %12 = arith.addi %9, %11 : vector<8x256xi32>
    %c16_i32 = arith.constant 16 : i32
    %13 = vector.broadcast %c16_i32 : i32 to vector<8x256xi32>
    %14 = arith.shrui %12, %13 : vector<8x256xi32>
    %15 = arith.xori %12, %14 : vector<8x256xi32>
    %c-2048144789_i32 = arith.constant -2048144789 : i32
    %16 = vector.broadcast %c-2048144789_i32 : i32 to vector<8x256xi32>
    %17 = arith.muli %15, %16 : vector<8x256xi32>
    %c13_i32 = arith.constant 13 : i32
    %18 = vector.broadcast %c13_i32 : i32 to vector<8x256xi32>
    %19 = arith.shrui %17, %18 : vector<8x256xi32>
    %20 = arith.xori %17, %19 : vector<8x256xi32>
    %c-1028477387_i32 = arith.constant -1028477387 : i32
    %21 = vector.broadcast %c-1028477387_i32 : i32 to vector<8x256xi32>
    %22 = arith.muli %20, %21 : vector<8x256xi32>
    %c16_i32_4 = arith.constant 16 : i32
    %23 = vector.broadcast %c16_i32_4 : i32 to vector<8x256xi32>
    %24 = arith.shrui %22, %23 : vector<8x256xi32>
    %25 = arith.xori %22, %24 : vector<8x256xi32>
    %26 = vector.broadcast %0 : vector<8x1xi32> to vector<8x256xi32>
    %27 = arith.cmpi ult, %25, %26 : vector<8x256xi32>
    %c0_5 = arith.constant 0 : index
    %c0_6 = arith.constant 0 : index
    %28 = vector.load %arg4[%c0_5, %c0_6] : memref<8x256xf32, #tpu.memory_space<vmem>>, vector<8x256xf32>
    %29 = vector.broadcast %1 : vector<8x1xf32> to vector<8x256xf32>
    %30 = arith.mulf %28, %29 : vector<8x256xf32>
    %c0_i32 = arith.constant 0 : i32
    %31 = arith.sitofp %c0_i32 : i32 to f32
    %32 = vector.broadcast %31 : f32 to vector<8x256xf32>
    %33 = arith.select %27, %30, %32 : vector<8x256xi1>, vector<8x256xf32>
    %c0_7 = arith.constant 0 : index
    %c0_8 = arith.constant 0 : index
    %34 = vector.load %arg5[%c0_7, %c0_8] : memref<8x256xf32, #tpu.memory_space<vmem>>, vector<8x256xf32>
    tpu.vector_store %arg5[%c0_7, %c0_8], %33 {strides = array<i32>} : memref<8x256xf32, #tpu.memory_space<vmem>>, vector<8x256xf32>,
    return
  }
  func.func @transform_0(%arg0: i32, %arg1: memref<1xi32, #tpu.memory_space<smem>>) -> (i32, i32) {
    %c0_i32 = arith.constant 0 : i32
    %c0_i32_0 = arith.constant 0 : i32
    return %arg0, %c0_i32 : i32, i32
  }
  func.func @transform_1(%arg0: i32, %arg1: memref<1xi32, #tpu.memory_space<smem>>) -> (i32, i32) {
    %c0_i32 = arith.constant 0 : i32
    %c0_i32_0 = arith.constant 0 : i32
    return %arg0, %c0_i32 : i32, i32
  }
  func.func @transform_2(%arg0: i32, %arg1: memref<1xi32, #tpu.memory_space<smem>>) -> (i32, i32) {
    %c0_i32 = arith.constant 0 : i32
    %c0_i32_0 = arith.constant 0 : i32
    return %arg0, %c0_i32 : i32, i32
  }
  func.func @transform_3(%arg0: i32, %arg1: memref<1xi32, #tpu.memory_space<smem>>) -> (i32, i32) {
    %c0_i32 = arith.constant 0 : i32
    %c0_i32_0 = arith.constant 0 : i32
    return %arg0, %c0_i32 : i32, i32
  }
}

</mosaic_0001>

<bundles_post_ra>
// kernel: tpu_custom_call.1
= control target key start
LH: loop header
LB: loop body
LE: loop exit
PB: predicated region body
PF: predicated region fallthrough
CT: control target
= control target key end

     0   :  { %v107_v1 = vmov 0   ;;  %s152_s0 = inlined_call_operand.<no memory space> [shape: s32[1], index: 0, kind: input, shape index: {}]   ;;  %s153_s1 = inlined_call_operand.vmem [shape: u32[8,1], index: 1, kind: input, shape index: {}]   ;;  %s154_s2 = inlined_call_operand.vmem [shape: f32[8,1], index: 2, kind: input, shape index: {}]   ;;  %s155_s3 = inlined_call_operand.vmem [shape: f32[8,256], index: 3, kind: input, shape index: {}]   ;;  %s156_s4 = inlined_call_operand.hbm [shape: f32[8,256], index: 4, kind: output, shape index: {}]  }
   0x1   :  { %v18_v0 = vld [vmem:[%s154_s2] sm:$0xff]  ;;  %84 = vset.pattern.permute.xlu0 %v107_v1 }
   0x2   :  { %10 = vsyncpa [#allocation5], 0  ;;  %59 = vperm.xlu0 %84, %v18_v0   ;;  %v17_v2 = vld [vmem:[%s153_s1] sm:$0xff]  ;;  %v23_v3 = vlaneseq  ;;  %s21_s21 = smul.u32 2654435769, %s152_s0  ;;  %v56_v29 = vld [vmem:[%s155_s3 + $0x8] sm:$0xff] }
   0x3   :  { %v55_v28 = vld [vmem:[%s155_s3] sm:$0xff]  ;;  %s108_s23 = smov [#allocation4]  }
   0x4   :  { %v26_v4 = vand.u32 127, %v23_v3  ;;  %v24_v5 = vshrl.u32 %v23_v3, 7  ;;  %v29_v7 = vstv %s21_s21  ;;  %s74_s24 = sshll.u32 %s108_s23, 4  ;;  %s75_s24 = int_to_ptr.vmem [resolvable:$true] %s74_s24 }
   0x5   :  { %s85_s25 = scalar_lea.vmem %s75_s24, 256  ;;  %p90_p1 = scmp.lt.s32.totalorder %s75_s24, %s75_s24 }
   0x6   :  { %51 = vperm.xlu0 %84, %v17_v2   ;;  %v27_v6 = vadd.s32 128, %v26_v4  ;;  %v28_v8 = vmul.u32 256, %v24_v5  ;;  %v30_v9 = vadd.s32 %v29_v7, %v26_v4  ;;  %p86_p0 = scmp.ne.s32.totalorder %s75_s24, %s85_s25  ;;  %p91_p2 = scmp.lt.s32.totalorder %s85_s25, %s85_s25 }
   0x8   :  { %v31_v10 = vadd.s32 %v29_v7, %v27_v6  ;;  %v32_v11 = vadd.s32 %v30_v9, %v28_v8  ;;  %p92_p3 = por %p91_p2, %p90_p1 }
   0xa   :  { %v33_v12 = vadd.s32 %v31_v10, %v28_v8  ;;  %v34_v13 = vshrl.u32 %v32_v11, 16  ;;  %p93_p4 = pnand %p92_p3, %p86_p0 }
   0xc   :  { %v35_v14 = vshrl.u32 %v33_v12, 16  ;;  %v36_v15 = vxor.u32 %v34_v13, %v32_v11 }
   0xe   :  { %v37_v16 = vxor.u32 %v35_v14, %v33_v12  ;;  %v38_v17 = vmul.u32 2246822507, %v36_v15 }
  0x10   :  { %v39_v18 = vmul.u32 2246822507, %v37_v16  ;;  %v40_v19 = vshrl.u32 %v38_v17, 13 }
  0x12   :  { %v41_v20 = vshrl.u32 %v39_v18, 13  ;;  %v42_v21 = vxor.u32 %v40_v19, %v38_v17 }
  0x14   :  { %v43_v22 = vxor.u32 %v41_v20, %v39_v18  ;;  %v44_v23 = vmul.u32 3266489909, %v42_v21 }
  0x16   :  { %v45_v24 = vmul.u32 3266489909, %v43_v22  ;;  %v46_v25 = vshrl.u32 %v44_v23, 16 }
  0x18   :  { %v47_v26 = vshrl.u32 %v45_v24, 16  ;;  %v48_v30 = vxor.u32 %v46_v25, %v44_v23 }
  0x1a   :  { %v49_v31 = vxor.u32 %v47_v26, %v45_v24 }
  0x7d   :  { %v60_v27 = vpop.permute.xlu0 %59 }
  0x7e   :  { %v62_v32 = vmul.f32 %v60_v27, %v55_v28  ;;  %v63_v33 = vmul.f32 %v60_v27, %v56_v29 }
  0x81   :  { %v52_v34 = vpop.permute.xlu0 %51 }
  0x82   :  { %vm53_vm0 = vcmp.lt.u32.totalorder %v48_v30, %v52_v34  ;;  %vm54_vm1 = vcmp.lt.u32.totalorder %v49_v31, %v52_v34 }
  0x83   :  { %v64_v35 = vsel %vm53_vm0, %v62_v32, 0.0  ;;  %v65_v36 = vsel %vm54_vm1, %v63_v33, 0.0 }
  0x84   :  { %66 = vst [vmem:[#allocation4] sm:$0xff] %v64_v35  ;;  %67 = vst [vmem:[#allocation4 + $0x8] sm:$0xff] %v65_v36 }
  0x85   :  { %96 = shalt.err (!%p93_p4)
}
  0x86   :  { %77 = dma.vmem_to_hbm [thread:$0]  %s75_s24, 256, %s156_s4, [#allocation5]  }
  0x87   :  { %105 = dma.done.wait [#allocation5], 256  }
  0x88   :  { %106 = vsyncadd [#allocation5], 4294967040 }
  0x89   :  { %81 = vsyncpa [#allocation5], 1 }

</bundles_post_ra>
